<compile_context>
chip_gen: v7x
topology: tpu7x:2x2x1
jax: 0.10.0
libtpu: 0.0.40
codegen_flags: <defaults>
</compile_context>

<pallas_src>
import jax
import jax.numpy as jnp
from jax.experimental import pallas as pl
from jax.experimental.pallas import tpu as pltpu


def _round_up(x, m):
    return (x + m - 1) // m * m


def _pick_tile_b(b_lanes, max_tile_b=8192):
    """Lane-aligned batch tile: minimal padding waste first, then prefer
    >= 2 tiles (megacore sharding) when the batch is big enough, then the
    fattest tile (amortises the ~0.35 us per-grid-step overhead)."""
    best_t, best_key = 128, None
    for t in (128, 256, 512, 1024, 2048, 4096, 8192):
        if t > max_tile_b:
            break
        pad = (-b_lanes) % t
        n_tiles = (b_lanes + pad) // t
        single_tile_penalty = 1 if (n_tiles < 2 and b_lanes >= 1024) else 0
        key = (pad, single_tile_penalty, -t)
        if best_key is None or key < best_key:
            best_key, best_t = key, t
    return best_t


# ----------------------------- Pallas kernel ------------------------------ #
def _fm_kernel(user_ref, tags_ref, icls_ref, tcls_ref,
               wt_ref, bt_ref, w1_ref, b1_ref, w2_ref, b2_ref, w3_ref, b3_ref,
               out_ref):
    # All compute in f32; bf16 is only the DMA dtype of the per-row inputs.
    user = user_ref[...].astype(jnp.float32)        # (D, TB)
    tags = tags_ref[...].astype(jnp.float32)        # (D, TB)
    icls = icls_ref[...].astype(jnp.float32)        # (H, TB)
    tcls = tcls_ref[...].astype(jnp.float32)        # (H, TB)

    wt = wt_ref[...]                                # (D, H) f32
    bt = bt_ref[...]                                # (D, 1) f32

    # text_fc for item & tag CLS features (batch-on-lanes => y^T = W^T x^T).
    item_text = jnp.dot(wt, icls, preferred_element_type=jnp.float32) + bt
    tag_text = jnp.dot(wt, tcls, preferred_element_type=jnp.float32) + bt

    # FMcross over the 3 fields [user, item_text, tags]:
    # 0.5 * ((sum f)^2 - sum f^2), reduced over the feature (sublane) axis.
    s = user + item_text + tags
    fm = 0.5 * jnp.sum(
        s * s - (user * user + item_text * item_text + tags * tags),
        axis=0, keepdims=True)                      # (1, TB)

    # deep MLP.  First layer as a single merged-K (K = 3*D) matmul against the
    # sublane-concatenated feature block — matches torch.stack(...).reshape.
    feats = jnp.concatenate([user, item_text, tags], axis=0)          # (3D, TB)
    h1 = jnp.maximum(
        jnp.dot(w1_ref[...], feats, preferred_element_type=jnp.float32)
        + b1_ref[...], 0.0)                                           # (d2, TB)
    h2 = jnp.maximum(
        jnp.dot(w2_ref[...], h1, preferred_element_type=jnp.float32)
        + b2_ref[...], 0.0)                                           # (d4, TB)
    # Final 1-unit layer as VPU multiply + sublane reduce (no N=1 MXU matmul).
    h3 = jnp.sum(h2 * w3_ref[...], axis=0, keepdims=True) + b3_ref[...]
    mlp_out = jax.nn.sigmoid(h3)                                      # (1, TB)

    # The reference model applies Sigmoid inside the MLP *and* again on
    # (fm + mlp); the double sigmoid is reproduced deliberately.
    click = jax.nn.sigmoid(fm + mlp_out)                              # (1, TB)

    # Per-example partial sums of ||tag_text - item_text||^2; mean in JAX.
    diff = tag_text - item_text
    closs = jnp.sum(diff * diff, axis=0, keepdims=True)               # (1, TB)

    out_ref[:, 0:1, :] = click[None]                                  # (1,1,TB)
    out_ref[:, 1:2, :] = closs[None]                                  # (1,1,TB)


def _fused_fm_head(user_emb, tags_emb, item_cls_t, tag_cls_t, params,
                   max_tile_b=8192):
    B, D = user_emb.shape
    H = item_cls_t.shape[0]

    tile_b = _pick_tile_b(_round_up(B, 128), max_tile_b)
    b_pad = _round_up(B, tile_b)
    num_tiles = b_pad // tile_b

    def pad_lanes(x):            # (F, B) -> (F, b_pad)
        return jnp.pad(x, ((0, 0), (0, b_pad - B)))

    # Per-row inputs in bf16 (halves HBM->VMEM DMA).  Cast before the
    # transpose so XLA fuses pad+transpose+convert into a single copy; all
    # kernel math runs in f32.
    user_t = pad_lanes(user_emb.astype(jnp.bfloat16).T)               # (D, b_pad)
    tags_t = pad_lanes(tags_emb.astype(jnp.bfloat16).T)               # (D, b_pad)
    icls_t = pad_lanes(item_cls_t.astype(jnp.bfloat16))               # (H, b_pad)
    tcls_t = pad_lanes(tag_cls_t.astype(jnp.bfloat16))                # (H, b_pad)

    # Weights/biases transposed for the batch-on-lanes layout.  All tiny f32;
    # constant index_maps keep them VMEM-resident across grid steps.
    wt_t = params["wt"].T                                             # (D, H)
    bt_t = params["bt"].T                                             # (D, 1)
    w1_t = params["w1"].T                                             # (d2, 3D)
    b1_t = params["b1"].T                                             # (d2, 1)
    w2_t = params["w2"].T                                             # (d4, d2)
    b2_t = params["b2"].T                                             # (d4, 1)
    w3 = params["w3"]                                                 # (d4, 1)
    b3 = params["b3"]                                                 # (1, 1)

    def resident(arr):
        return pl.BlockSpec(arr.shape, lambda i, _n=arr.ndim: (0,) * _n)

    def batched(rows):
        return pl.BlockSpec((rows, tile_b), lambda i: (0, i))

    out = pl.pallas_call(
        _fm_kernel,
        out_shape=jax.ShapeDtypeStruct((num_tiles, 2, tile_b), jnp.float32),
        grid=(num_tiles,),
        in_specs=[
            batched(D), batched(D), batched(H), batched(H),
            resident(wt_t), resident(bt_t),
            resident(w1_t), resident(b1_t),
            resident(w2_t), resident(b2_t),
            resident(w3), resident(b3),
        ],
        out_specs=pl.BlockSpec((1, 2, tile_b), lambda i: (i, 0, 0)),
        compiler_params=pltpu.CompilerParams(
            dimension_semantics=("parallel",),
            vmem_limit_bytes=48 * 1024 * 1024),
    )(user_t, tags_t, icls_t, tcls_t,
      wt_t, bt_t, w1_t, b1_t, w2_t, b2_t, w3, b3)

    click = out[:, 0, :].reshape(b_pad)[:B]
    contrastive_loss = jnp.sum(out[:, 1, :].reshape(b_pad)[:B]) / (B * D)
    return click, contrastive_loss


# ------------------------------- JAX glue --------------------------------- #
def _renorm(rows, max_norm=2.0):
    """PyTorch nn.Embedding(max_norm=...) forward-time row renormalisation."""
    n = jnp.linalg.norm(rows, axis=-1, keepdims=True)
    return rows * jnp.minimum(1.0, max_norm / jnp.maximum(n, 1e-7))


def _bert_cls_stub_t(word_table, input_ids, attention_mask):
    # TODO(synk): frozen pretrained BertModel has no clean Pallas equivalent;
    # a masked-mean of token embeddings stands in for the "[CLS]" feature.
    emb = word_table[input_ids]                                   # (B, L, H)
    m = attention_mask.astype(jnp.float32)                        # (B, L)
    num = jnp.einsum("blh,bl->hb", emb, m)                        # (H, B)
    den = jnp.maximum(jnp.sum(m, axis=1), 1.0)                    # (B,)
    return num / den[None, :]                                     # (H, B)


def init_params(key, n_users, n_item_tags, dim, bert_hidden, vocab_size):
    ks = jax.random.split(key, 12)
    d2 = (dim * 3) // 2
    d4 = (dim * 3) // 4

    def lin(kw, kb, fan_in, fan_out):
        bound = 1.0 / jnp.sqrt(fan_in)
        w = jax.random.uniform(kw, (fan_in, fan_out), jnp.float32, -bound, bound)
        b = jax.random.uniform(kb, (1, fan_out), jnp.float32, -bound, bound)
        return w, b

    wt, bt = lin(ks[4], ks[5], bert_hidden, dim)
    w1, b1 = lin(ks[6], ks[7], dim * 3, d2)
    w2, b2 = lin(ks[8], ks[9], d2, d4)
    w3, b3 = lin(ks[10], ks[11], d4, 1)
    return {
        "user_table": jax.random.normal(ks[0], (n_users, dim), jnp.float32),
        "tag_table": jax.random.normal(ks[1], (n_item_tags, dim), jnp.float32),
        "word_table": jax.random.normal(ks[2], (vocab_size, bert_hidden),
                                        jnp.float32) * 0.1,
        "wt": wt, "bt": bt, "w1": w1, "b1": b1,
        "w2": w2, "b2": b2, "w3": w3, "b3": b3,
    }


@jax.jit
def multi_feature_fm_forward(params, user_id, tag_ids,
                             item_text_input, item_text_mask,
                             tag_text_input, tag_text_mask):
    user_emb = _renorm(params["user_table"][user_id])                    # (B, D)
    # Mean over the tag axis done here (cuts the kernel's DMA by T x).
    tags_emb = jnp.mean(_renorm(params["tag_table"][tag_ids]), axis=1)   # (B, D)
    item_cls_t = _bert_cls_stub_t(params["word_table"],
                                  item_text_input, item_text_mask)       # (H, B)
    tag_cls_t = _bert_cls_stub_t(params["word_table"],
                                 tag_text_input, tag_text_mask)          # (H, B)
    return _fused_fm_head(user_emb, tags_emb, item_cls_t, tag_cls_t, params)


# --------------------------------- main ------------------------------------ #
if __name__ == "__main__":
    n_users, n_item_tags, dim = 100, 50, 32
    bert_hidden, vocab_size = 64, 200
    B, T, L = 2, 4, 8

    key = jax.random.PRNGKey(0)
    kp, k1, k2, k3, k4 = jax.random.split(key, 5)
    params = init_params(kp, n_users, n_item_tags, dim, bert_hidden, vocab_size)

    user_id = jax.random.randint(k1, (B,), 0, n_users)
    tag_ids = jax.random.randint(k2, (B, T), 0, n_item_tags)
    item_text_input = jax.random.randint(k3, (B, L), 0, vocab_size)
    tag_text_input = jax.random.randint(k4, (B, L), 0, vocab_size)
    item_text_mask = jnp.ones((B, L), jnp.int32)
    tag_text_mask = jnp.concatenate(
        [jnp.ones((B, L - 2), jnp.int32), jnp.zeros((B, 2), jnp.int32)], axis=1)

    click, closs = multi_feature_fm_forward(
        params, user_id, tag_ids,
        item_text_input, item_text_mask,
        tag_text_input, tag_text_mask)
    jax.block_until_ready((click, closs))

    assert click.shape == (B,) and closs.shape == ()
    assert bool(jnp.all(jnp.isfinite(click))) and bool(jnp.isfinite(closs))
    print("KERNEL_OK")
</pallas_src>

<mosaic_0001>
module attributes {stable_mosaic.version = 11 : i64} {
  func.func @_fm_kernel(%arg0: i32, %arg1: memref<32x128xbf16, #tpu.memory_space<vmem>>, %arg2: memref<32x128xbf16, #tpu.memory_space<vmem>>, %arg3: memref<64x128xbf16, #tpu.memory_space<vmem>>, %arg4: memref<64x128xbf16, #tpu.memory_space<vmem>>, %arg5: memref<32x64xf32, #tpu.memory_space<vmem>>, %arg6: memref<32x1xf32, #tpu.memory_space<vmem>>, %arg7: memref<48x96xf32, #tpu.memory_space<vmem>>, %arg8: memref<48x1xf32, #tpu.memory_space<vmem>>, %arg9: memref<24x48xf32, #tpu.memory_space<vmem>>, %arg10: memref<24x1xf32, #tpu.memory_space<vmem>>, %arg11: memref<24x1xf32, #tpu.memory_space<vmem>>, %arg12: memref<1x1xf32, #tpu.memory_space<vmem>>, %arg13: memref<1x2x128xf32, #tpu.memory_space<vmem>>) attributes {dimension_semantics = [#tpu.dimension_semantics<parallel>], iteration_bounds = array<i64: 1>, scalar_prefetch = 0 : i64, scratch_operands = 0 : i64, tpu.core_type = #tpu.core_type<tc>, window_params = [{transform_indices = @transform_0, window_bounds = array<i64: 32, 128>}, {transform_indices = @transform_1, window_bounds = array<i64: 32, 128>}, {transform_indices = @transform_2, window_bounds = array<i64: 64, 128>}, {transform_indices = @transform_3, window_bounds = array<i64: 64, 128>}, {pipeline_mode = #tpu.pipeline_mode<synchronous>, transform_indices = @transform_4, window_bounds = array<i64: 32, 64>}, {pipeline_mode = #tpu.pipeline_mode<synchronous>, transform_indices = @transform_5, window_bounds = array<i64: 32, 1>}, {pipeline_mode = #tpu.pipeline_mode<synchronous>, transform_indices = @transform_6, window_bounds = array<i64: 48, 96>}, {pipeline_mode = #tpu.pipeline_mode<synchronous>, transform_indices = @transform_7, window_bounds = array<i64: 48, 1>}, {pipeline_mode = #tpu.pipeline_mode<synchronous>, transform_indices = @transform_8, window_bounds = array<i64: 24, 48>}, {pipeline_mode = #tpu.pipeline_mode<synchronous>, transform_indices = @transform_9, window_bounds = array<i64: 24, 1>}, {pipeline_mode = #tpu.pipeline_mode<synchronous>, transform_indices = @transform_10, window_bounds = array<i64: 24, 1>}, {pipeline_mode = #tpu.pipeline_mode<synchronous>, transform_indices = @transform_11, window_bounds = array<i64: 1, 1>}, {transform_indices = @transform_12, window_bounds = array<i64: 1, 2, 128>}]} {
    %c0 = arith.constant 0 : index
    %c0_0 = arith.constant 0 : index
    %0 = vector.load %arg1[%c0, %c0_0] : memref<32x128xbf16, #tpu.memory_space<vmem>>, vector<32x128xbf16>
    %1 = arith.extf %0 : vector<32x128xbf16> to vector<32x128xf32>
    %c0_1 = arith.constant 0 : index
    %c0_2 = arith.constant 0 : index
    %2 = vector.load %arg2[%c0_1, %c0_2] : memref<32x128xbf16, #tpu.memory_space<vmem>>, vector<32x128xbf16>
    %3 = arith.extf %2 : vector<32x128xbf16> to vector<32x128xf32>
    %c0_3 = arith.constant 0 : index
    %c0_4 = arith.constant 0 : index
    %4 = vector.load %arg3[%c0_3, %c0_4] : memref<64x128xbf16, #tpu.memory_space<vmem>>, vector<64x128xbf16>
    %5 = arith.extf %4 : vector<64x128xbf16> to vector<64x128xf32>
    %c0_5 = arith.constant 0 : index
    %c0_6 = arith.constant 0 : index
    %6 = vector.load %arg4[%c0_5, %c0_6] : memref<64x128xbf16, #tpu.memory_space<vmem>>, vector<64x128xbf16>
    %7 = arith.extf %6 : vector<64x128xbf16> to vector<64x128xf32>
    %c0_7 = arith.constant 0 : index
    %c0_8 = arith.constant 0 : index
    %8 = vector.load %arg5[%c0_7, %c0_8] : memref<32x64xf32, #tpu.memory_space<vmem>>, vector<32x64xf32>
    %c0_9 = arith.constant 0 : index
    %c0_10 = arith.constant 0 : index
    %9 = vector.load %arg6[%c0_9, %c0_10] : memref<32x1xf32, #tpu.memory_space<vmem>>, vector<32x1xf32>
    %cst = arith.constant dense<0.000000e+00> : vector<32x128xf32>
    %10 = tpu.matmul %8, %5, %cst {dimension_numbers = #tpu.dot_dimension_numbers<[1], [0], [0], [1], [0, 0, 1, 1], [], []>} : vector<32x64xf32>, vector<64x128xf32>, vector<32x128xf32> -> vector<32x128xf32>
    %11 = vector.broadcast %9 : vector<32x1xf32> to vector<32x128xf32>
    %12 = arith.addf %10, %11 : vector<32x128xf32>
    %cst_11 = arith.constant dense<0.000000e+00> : vector<32x128xf32>
    %13 = tpu.matmul %8, %7, %cst_11 {dimension_numbers = #tpu.dot_dimension_numbers<[1], [0], [0], [1], [0, 0, 1, 1], [], []>} : vector<32x64xf32>, vector<64x128xf32>, vector<32x128xf32> -> vector<32x128xf32>
    %14 = vector.broadcast %9 : vector<32x1xf32> to vector<32x128xf32>
    %15 = arith.addf %13, %14 : vector<32x128xf32>
    %16 = arith.addf %1, %12 : vector<32x128xf32>
    %17 = arith.addf %16, %3 : vector<32x128xf32>
    %18 = arith.mulf %17, %17 : vector<32x128xf32>
    %19 = arith.mulf %1, %1 : vector<32x128xf32>
    %20 = arith.mulf %12, %12 : vector<32x128xf32>
    %21 = arith.addf %19, %20 : vector<32x128xf32>
    %22 = arith.mulf %3, %3 : vector<32x128xf32>
    %23 = arith.addf %21, %22 : vector<32x128xf32>
    %24 = arith.subf %18, %23 : vector<32x128xf32>
    %cst_12 = arith.constant dense<0.000000e+00> : vector<128xf32>
    %25 = vector.multi_reduction <add>, %24, %cst_12 [0] : vector<32x128xf32> to vector<128xf32>
    %26 = vector.shape_cast %25 : vector<128xf32> to vector<1x128xf32>
    %cst_13 = arith.constant 5.000000e-01 : f32
    %27 = vector.broadcast %cst_13 : f32 to vector<1x128xf32>
    %28 = arith.mulf %27, %26 : vector<1x128xf32>
    %29 = tpu.concatenate %1, %12, %3 in 0 : vector<32x128xf32>, vector<32x128xf32>, vector<32x128xf32> -> vector<96x128xf32>
    %c0_14 = arith.constant 0 : index
    %c0_15 = arith.constant 0 : index
    %30 = vector.load %arg7[%c0_14, %c0_15] : memref<48x96xf32, #tpu.memory_space<vmem>>, vector<48x96xf32>
    %cst_16 = arith.constant dense<0.000000e+00> : vector<48x128xf32>
    %31 = tpu.matmul %30, %29, %cst_16 {dimension_numbers = #tpu.dot_dimension_numbers<[1], [0], [0], [1], [0, 0, 1, 1], [], []>} : vector<48x96xf32>, vector<96x128xf32>, vector<48x128xf32> -> vector<48x128xf32>
    %c0_17 = arith.constant 0 : index
    %c0_18 = arith.constant 0 : index
    %32 = vector.load %arg8[%c0_17, %c0_18] : memref<48x1xf32, #tpu.memory_space<vmem>>, vector<48x1xf32>
    %33 = vector.broadcast %32 : vector<48x1xf32> to vector<48x128xf32>
    %34 = arith.addf %31, %33 : vector<48x128xf32>
    %cst_19 = arith.constant 0.000000e+00 : f32
    %35 = vector.broadcast %cst_19 : f32 to vector<48x128xf32>
    %36 = arith.maximumf %34, %35 : vector<48x128xf32>
    %c0_20 = arith.constant 0 : index
    %c0_21 = arith.constant 0 : index
    %37 = vector.load %arg9[%c0_20, %c0_21] : memref<24x48xf32, #tpu.memory_space<vmem>>, vector<24x48xf32>
    %cst_22 = arith.constant dense<0.000000e+00> : vector<24x128xf32>
    %38 = tpu.matmul %37, %36, %cst_22 {dimension_numbers = #tpu.dot_dimension_numbers<[1], [0], [0], [1], [0, 0, 1, 1], [], []>} : vector<24x48xf32>, vector<48x128xf32>, vector<24x128xf32> -> vector<24x128xf32>
    %c0_23 = arith.constant 0 : index
    %c0_24 = arith.constant 0 : index
    %39 = vector.load %arg10[%c0_23, %c0_24] : memref<24x1xf32, #tpu.memory_space<vmem>>, vector<24x1xf32>
    %40 = vector.broadcast %39 : vector<24x1xf32> to vector<24x128xf32>
    %41 = arith.addf %38, %40 : vector<24x128xf32>
    %cst_25 = arith.constant 0.000000e+00 : f32
    %42 = vector.broadcast %cst_25 : f32 to vector<24x128xf32>
    %43 = arith.maximumf %41, %42 : vector<24x128xf32>
    %c0_26 = arith.constant 0 : index
    %c0_27 = arith.constant 0 : index
    %44 = vector.load %arg11[%c0_26, %c0_27] : memref<24x1xf32, #tpu.memory_space<vmem>>, vector<24x1xf32>
    %45 = vector.broadcast %44 : vector<24x1xf32> to vector<24x128xf32>
    %46 = arith.mulf %43, %45 : vector<24x128xf32>
    %cst_28 = arith.constant dense<0.000000e+00> : vector<128xf32>
    %47 = vector.multi_reduction <add>, %46, %cst_28 [0] : vector<24x128xf32> to vector<128xf32>
    %48 = vector.shape_cast %47 : vector<128xf32> to vector<1x128xf32>
    %c0_29 = arith.constant 0 : index
    %c0_30 = arith.constant 0 : index
    %49 = vector.load %arg12[%c0_29, %c0_30] : memref<1x1xf32, #tpu.memory_space<vmem>>, vector<1x1xf32>
    %50 = vector.broadcast %49 : vector<1x1xf32> to vector<1x128xf32>
    %51 = arith.addf %48, %50 : vector<1x128xf32>
    %52 = arith.negf %51 : vector<1x128xf32>
    %53 = math.exp %52 : vector<1x128xf32>
    %cst_31 = arith.constant 1.000000e+00 : f32
    %54 = vector.broadcast %cst_31 : f32 to vector<1x128xf32>
    %55 = arith.addf %54, %53 : vector<1x128xf32>
    %56 = arith.divf %54, %55 : vector<1x128xf32>
    %57 = arith.addf %28, %56 : vector<1x128xf32>
    %58 = arith.negf %57 : vector<1x128xf32>
    %59 = math.exp %58 : vector<1x128xf32>
    %cst_32 = arith.constant 1.000000e+00 : f32
    %60 = vector.broadcast %cst_32 : f32 to vector<1x128xf32>
    %61 = arith.addf %60, %59 : vector<1x128xf32>
    %62 = arith.divf %60, %61 : vector<1x128xf32>
    %63 = arith.subf %15, %12 : vector<32x128xf32>
    %64 = arith.mulf %63, %63 : vector<32x128xf32>
    %cst_33 = arith.constant dense<0.000000e+00> : vector<128xf32>
    %65 = vector.multi_reduction <add>, %64, %cst_33 [0] : vector<32x128xf32> to vector<128xf32>
    %66 = vector.shape_cast %65 : vector<128xf32> to vector<1x128xf32>
    %67 = vector.shape_cast %62 : vector<1x128xf32> to vector<1x1x128xf32>
    %c0_34 = arith.constant 0 : index
    %c0_35 = arith.constant 0 : index
    %c0_36 = arith.constant 0 : index
    %68 = vector.load %arg13[%c0_34, %c0_35, %c0_36] : memref<1x2x128xf32, #tpu.memory_space<vmem>>, vector<1x1x128xf32>
    tpu.vector_store %arg13[%c0_34, %c0_35, %c0_36], %67 {strides = array<i32>} : memref<1x2x128xf32, #tpu.memory_space<vmem>>, vector<1x1x128xf32>,
    %69 = vector.shape_cast %66 : vector<1x128xf32> to vector<1x1x128xf32>
    %c0_37 = arith.constant 0 : index
    %c1 = arith.constant 1 : index
    %c0_38 = arith.constant 0 : index
    %70 = vector.load %arg13[%c0_37, %c1, %c0_38] : memref<1x2x128xf32, #tpu.memory_space<vmem>>, vector<1x1x128xf32>
    tpu.vector_store %arg13[%c0_37, %c1, %c0_38], %69 {strides = array<i32>} : memref<1x2x128xf32, #tpu.memory_space<vmem>>, vector<1x1x128xf32>,
    return
  }
  func.func @transform_0(%arg0: i32) -> (i32, i32) {
    %c0_i32 = arith.constant 0 : i32
    %c0_i32_0 = arith.constant 0 : i32
    return %c0_i32, %arg0 : i32, i32
  }
  func.func @transform_1(%arg0: i32) -> (i32, i32) {
    %c0_i32 = arith.constant 0 : i32
    %c0_i32_0 = arith.constant 0 : i32
    return %c0_i32, %arg0 : i32, i32
  }
  func.func @transform_2(%arg0: i32) -> (i32, i32) {
    %c0_i32 = arith.constant 0 : i32
    %c0_i32_0 = arith.constant 0 : i32
    return %c0_i32, %arg0 : i32, i32
  }
  func.func @transform_3(%arg0: i32) -> (i32, i32) {
    %c0_i32 = arith.constant 0 : i32
    %c0_i32_0 = arith.constant 0 : i32
    return %c0_i32, %arg0 : i32, i32
  }
  func.func @transform_4(%arg0: i32) -> (i32, i32) {
    %c0_i32 = arith.constant 0 : i32
    %c0_i32_0 = arith.constant 0 : i32
    %c0_i32_1 = arith.constant 0 : i32
    return %c0_i32, %c0_i32_0 : i32, i32
  }
  func.func @transform_5(%arg0: i32) -> (i32, i32) {
    %c0_i32 = arith.constant 0 : i32
    %c0_i32_0 = arith.constant 0 : i32
    %c0_i32_1 = arith.constant 0 : i32
    return %c0_i32, %c0_i32_0 : i32, i32
  }
  func.func @transform_6(%arg0: i32) -> (i32, i32) {
    %c0_i32 = arith.constant 0 : i32
    %c0_i32_0 = arith.constant 0 : i32
    %c0_i32_1 = arith.constant 0 : i32
    return %c0_i32, %c0_i32_0 : i32, i32
  }
  func.func @transform_7(%arg0: i32) -> (i32, i32) {
    %c0_i32 = arith.constant 0 : i32
    %c0_i32_0 = arith.constant 0 : i32
    %c0_i32_1 = arith.constant 0 : i32
    return %c0_i32, %c0_i32_0 : i32, i32
  }
  func.func @transform_8(%arg0: i32) -> (i32, i32) {
    %c0_i32 = arith.constant 0 : i32
    %c0_i32_0 = arith.constant 0 : i32
    %c0_i32_1 = arith.constant 0 : i32
    return %c0_i32, %c0_i32_0 : i32, i32
  }
  func.func @transform_9(%arg0: i32) -> (i32, i32) {
    %c0_i32 = arith.constant 0 : i32
    %c0_i32_0 = arith.constant 0 : i32
    %c0_i32_1 = arith.constant 0 : i32
    return %c0_i32, %c0_i32_0 : i32, i32
  }
  func.func @transform_10(%arg0: i32) -> (i32, i32) {
    %c0_i32 = arith.constant 0 : i32
    %c0_i32_0 = arith.constant 0 : i32
    %c0_i32_1 = arith.constant 0 : i32
    return %c0_i32, %c0_i32_0 : i32, i32
  }
  func.func @transform_11(%arg0: i32) -> (i32, i32) {
    %c0_i32 = arith.constant 0 : i32
    %c0_i32_0 = arith.constant 0 : i32
    %c0_i32_1 = arith.constant 0 : i32
    return %c0_i32, %c0_i32_0 : i32, i32
  }
  func.func @transform_12(%arg0: i32) -> (i32, i32, i32) {
    %c0_i32 = arith.constant 0 : i32
    %c0_i32_0 = arith.constant 0 : i32
    %c0_i32_1 = arith.constant 0 : i32
    return %arg0, %c0_i32, %c0_i32_0 : i32, i32, i32
  }
}

</mosaic_0001>

<bundles_post_ra>
// kernel: multi_feature_fm_forward.1
= control target key start
LH: loop header
LB: loop body
LE: loop exit
PB: predicated region body
PF: predicated region fallthrough
CT: control target
= control target key end

     0   :  { %v1003_v3 = vmov 0   ;;  %vm119_vm0 = vcmask 523264   ;;  %vm390_vm1 = vcmask 785408   ;;  %vm1005_vm2 = vmmov 0   ;;  %s1237_s2 = inlined_call_operand.vmem [shape: bf16[64,128], index: 2, kind: input, shape index: {}]   ;;  %s1238_s3 = inlined_call_operand.vmem [shape: bf16[64,128], index: 3, kind: input, shape index: {}]   ;;  %s1239_s4 = inlined_call_operand.vmem [shape: f32[32,64], index: 4, kind: input, shape index: {}]   ;;  %s1240_s11 = inlined_call_operand.<no memory space> [shape: f32[1,1], index: 11, kind: input, shape index: {}]   ;;  %s1241_s5 = inlined_call_operand.vmem [shape: f32[32,1], index: 5, kind: input, shape index: {}]   ;;  %s1242_s7 = inlined_call_operand.vmem [shape: f32[48,1], index: 7, kind: input, shape index: {}]   ;;  %s1243_s9 = inlined_call_operand.vmem [shape: f32[24,1], index: 9, kind: input, shape index: {}]   ;;  %s1244_s10 = inlined_call_operand.vmem [shape: f32[24,1], index: 10, kind: input, shape index: {}]   ;;  %s1245_s0 = inlined_call_operand.vmem [shape: bf16[32,128], index: 0, kind: input, shape index: {}]   ;;  %s1246_s6 = inlined_call_operand.vmem [shape: f32[48,96], index: 6, kind: input, shape index: {}]   ;;  %s1247_s1 = inlined_call_operand.vmem [shape: bf16[32,128], index: 1, kind: input, shape index: {}]   ;;  %s1248_s12 = inlined_call_operand.vmem [shape: f32[1,2,128], index: 12, kind: output, shape index: {}]   ;;  %s1249_s8 = inlined_call_operand.vmem [shape: f32[24,48], index: 8, kind: input, shape index: {}]  }
   0x1   :  { %v736_v0 = vld [vmem:[%s1237_s2] sm:$0xff]   ;;  %v769_v2 = vld [vmem:[%s1237_s2 + $0x8] sm:$0xff]   ;;  %993 = vset.pattern.permute.xlu0 %v1003_v3  ;;  %994 = vset.pattern.permute.xlu1 %v1003_v3  ;;  %v17_v4 = vstv %s1240_s11  ;;  %v770_v7 = vld [vmem:[%s1237_s2 + $0x10] sm:$0xff]   ;;  %vm531_vm3 = vcmask 392192  }
   0x2   :  { %v752_v1 = vld [vmem:[%s1238_s3] sm:$0xff]   ;;  %925 = vmatprep.subr.bf16.mxu0 %v736_v0  ;;  %v772_v5 = vld [vmem:[%s1238_s3 + $0x8] sm:$0xff]   ;;  %18 = vst [vmem:[#allocation2] sm:$0x1] %v17_v4  ;;  %v773_v8 = vld [vmem:[%s1238_s3 + $0x10] sm:$0xff]  }
   0x3   :  { %941 = vmatprep.subr.bf16.mxu1 %v752_v1  ;;  %927 = vmatpush3.bf16.msra.mxu0 %v736_v0  ;;  %v91_v6 = vld [vmem:[%s1239_s4] sm:$0xff]  ;;  %v97_v10 = vld [vmem:[%s1241_s5 + $0x10] sm:$0xff]  ;;  %v96_v11 = vld [vmem:[%s1241_s5 + $0x8] sm:$0xff] }
   0x4   :  { %943 = vmatpush3.bf16.msra.mxu1 %v752_v1  ;;  %929 = vmatprep.subr.bf16.mxu0 %v769_v2  ;;  %v95_v9 = vld [vmem:[%s1241_s5] sm:$0xff]  ;;  %v98_v12 = vld [vmem:[%s1241_s5 + $0x18] sm:$0xff]  ;;  %v355_v16 = vld [vmem:[%s1242_s7 + $0x8] sm:$0xff] }
   0x5   :  { %945 = vmatprep.subr.bf16.mxu1 %v772_v5  ;;  %842 = vmatprep.mubr.msk.f32.mxu0 %vm119_vm0, %v91_v6  ;;  %v771_v13 = vld [vmem:[%s1237_s2 + $0x18] sm:$0xff]   ;;  %v354_v15 = vld [vmem:[%s1242_s7] sm:$0xff]  ;;  %v92_v17 = vld [vmem:[%s1239_s4 + $0x8] sm:$0xff] }
   0x6   :  { %864 = vmatprep.mubr.msk.f32.mxu1 %vm119_vm0, %v91_v6  ;;  %101 = vperm.xlu0 %993, %v95_v9   ;;  %v774_v14 = vld [vmem:[%s1238_s3 + $0x18] sm:$0xff]   ;;  %v93_v18 = vld [vmem:[%s1239_s4 + $0x10] sm:$0xff]  ;;  %v358_v22 = vld [vmem:[%s1242_s7 + $0x20] sm:$0xff] }
   0x7   :  { %111 = vperm.xlu1 %994, %v97_v10   ;;  %931 = vmatpush3.bf16.msra.mxu0 %v769_v2  ;;  %v356_v19 = vld [vmem:[%s1242_s7 + $0x10] sm:$0xff]  ;;  %v357_v20 = vld [vmem:[%s1242_s7 + $0x18] sm:$0xff]  ;;  %v359_v23 = vld [vmem:[%s1242_s7 + $0x28] sm:$0xff] }
   0x8   :  { %947 = vmatpush3.bf16.msra.mxu1 %v772_v5  ;;  %933 = vmatprep.subr.bf16.mxu0 %v770_v7  ;;  %v94_v21 = vld [vmem:[%s1239_s4 + $0x18] sm:$0xff]  ;;  %v513_v24 = vld [vmem:[%s1243_s9] sm:$0xff]  ;;  %v514_v25 = vld [vmem:[%s1243_s9 + $0x8] sm:$0xff] }
   0x9   :  { %949 = vmatprep.subr.bf16.mxu1 %v773_v8  ;;  %v515_v26 = vld [vmem:[%s1243_s9 + $0x10] sm:$0xff]  ;;  %v624_v27 = vld [vmem:[%s1244_s10] sm:$0xff]  ;;  %v625_v28 = vld [vmem:[%s1244_s10 + $0x8] sm:$0xff] }
   0xa   :  { %106 = vperm.xlu0 %993, %v96_v11   ;;  %v626_v29 = vld [vmem:[%s1244_s10 + $0x10] sm:$0xff]  ;;  %v653_v30 = vld [vmem:[#allocation2] sm:$0x1]  ;;  %v767_v32 = vld [vmem:[%s1245_s0 + $0x8] sm:$0xff]  }
   0xb   :  { %116 = vperm.xlu1 %994, %v98_v12   ;;  %935 = vmatpush3.bf16.msra.mxu0 %v770_v7  ;;  %v720_v31 = vld [vmem:[%s1245_s0] sm:$0xff]   ;;  %v1185_v36 = vld [vmem:[%s1247_s1 + $0x8] sm:$0xff]   ;;  %v726_v39 = vunpack.c.h.bf16 %v767_v32  ;;  %v725_v41 = vunpack.c.l.bf16 %v767_v32 }
   0xc   :  { %951 = vmatpush3.bf16.msra.mxu1 %v773_v8  ;;  %937 = vmatprep.subr.bf16.mxu0 %v771_v13  ;;  %v348_v33 = vld [vmem:[%s1246_s6] sm:$0xff]  ;;  %v721_v37 = vunpack.c.l.bf16 %v720_v31  ;;  %v722_v38 = vunpack.c.h.bf16 %v720_v31  ;;  %v734_v44 = vunpack.c.h.bf16 %v1185_v36  ;;  %v733_v46 = vunpack.c.l.bf16 %v1185_v36 }
   0xd   :  { %953 = vmatprep.subr.bf16.mxu1 %v774_v14  ;;  %v1180_v35 = vld [vmem:[%s1247_s1] sm:$0xff]   ;;  %v317_v51 = vmul.f32 %v726_v39, %v726_v39  ;;  %v316_v56 = vmul.f32 %v725_v41, %v725_v41 }
   0xe   :  { %362 = vperm.xlu0 %993, %v354_v15   ;;  %v730_v42 = vunpack.c.h.bf16 %v1180_v35  ;;  %v729_v43 = vunpack.c.l.bf16 %v1180_v35  ;;  %v314_v47 = vmul.f32 %v721_v37, %v721_v37  ;;  %v315_v48 = vmul.f32 %v722_v38, %v722_v38 }
   0xf   :  { %367 = vperm.xlu1 %994, %v355_v16   ;;  %939 = vmatpush3.bf16.msra.mxu0 %v771_v13  ;;  %v329_v61 = vmul.f32 %v734_v44, %v734_v44  ;;  %v328_v2 = vmul.f32 %v733_v46, %v733_v46 }
  0x10   :  { %955 = vmatpush3.bf16.msra.mxu1 %v774_v14  ;;  %957 = vmatprep.subr.bf16.mxu0 %v720_v31  ;;  %v327_v57 = vmul.f32 %v730_v42, %v730_v42  ;;  %v326_v60 = vmul.f32 %v729_v43, %v729_v43 }
  0x12   :  { %843 = vmatmul.mubr.msk.f32.vlgmr.msra.gmra.mrb[0].mxu0 %vm119_vm0, %v92_v17  ;;  %372 = vperm.xlu0 %993, %v356_v19  }
  0x13   :  { %865 = vmatmul.mubr.msk.f32.vlgmr.msra.gmra.mrb[0].mxu1 %vm119_vm0, %v92_v17  ;;  %845 = vmatprep.mubr.msk.f32.mxu0 %vm119_vm0, %v93_v18 }
  0x14   :  { %867 = vmatprep.mubr.msk.f32.mxu1 %vm119_vm0, %v93_v18  ;;  %377 = vperm.xlu1 %994, %v357_v20  }
  0x15   :  { %959 = vmatpush3.bf16.msra.mxu0 %v720_v31 }
  0x16   :  { %846 = vmatmul.mubr.msk.f32.gmra.mrb[2].mxu0 %vm119_vm0, %v94_v21  ;;  %382 = vperm.xlu0 %993, %v358_v22  }
  0x17   :  { %868 = vmatmul.mubr.msk.f32.gmra.mrb[2].mxu1 %vm119_vm0, %v94_v21  ;;  %961 = vmatprep.subr.bf16.mxu0 %v767_v32 }
  0x18   :  { %387 = vperm.xlu1 %994, %v359_v23   ;;  %894 = vmatprep.mubr.msk.f32.mxu0 %vm390_vm1, %v348_v33 }
  0x19   :  { %963 = vmatpush3.bf16.msra.mxu0 %v767_v32 }
  0x1a   :  { %518 = vperm.xlu0 %993, %v513_v24  }
  0x1c   :  { %523 = vperm.xlu1 %994, %v514_v25  }
  0x1e   :  { %528 = vperm.xlu0 %993, %v515_v26  }
  0x20   :  { %629 = vperm.xlu1 %994, %v624_v27  }
  0x22   :  { %634 = vperm.xlu0 %993, %v625_v28  }
  0x24   :  { %639 = vperm.xlu1 %994, %v626_v29  }
  0x26   :  { %656 = vperm.xlu0 %993, %v653_v30  }
  0x85   :  { %v102_v34 = vpop.permute.xlu0 %101 }
  0x86   :  { %v112_v40 = vpop.permute.xlu1 %111 }
  0x89   :  { %v107_v45 = vpop.permute.xlu0 %106 }
  0x8a   :  { %v117_v62 = vpop.permute.xlu1 %116 }
  0xe5   :  { %v844_v49 = vpop.f32.mrb[0].mxu0 }
  0xe6   :  { %v866_v50 = vpop.f32.mrb[0].mxu1  ;;  %v204_v52 = vadd.f32 %v844_v49, %v107_v45  ;;  %v198_v54 = vpop.f32.mrb[1].mxu0 }
  0xe7   :  { %v289_v53 = vadd.f32 %v866_v50, %v107_v45  ;;  %v283_v55 = vpop.f32.mrb[1].mxu1  ;;  %v199_v58 = vadd.f32 %v198_v54, %v102_v34 }
  0xe8   :  { %v284_v59 = vadd.f32 %v283_v55, %v102_v34  ;;  %v303_v63 = vadd.f32 %v722_v38, %v204_v52  ;;  %v319_v0 = vmul.f32 %v204_v52, %v204_v52 }
  0xe9   :  { %v678_v1 = vsub.f32 %v289_v53, %v204_v52  ;;  %v302_v3 = vadd.f32 %v721_v37, %v199_v58  ;;  %v318_v4 = vmul.f32 %v199_v58, %v199_v58  ;;  %v847_v6 = vpop.f32.mrb[2].mxu0  ;;  %v964_v8 = vpack.c.bf16 %v204_v52, %v199_v58 }
  0xea   :  { %v677_v5 = vsub.f32 %v284_v59, %v199_v58  ;;  %v869_v7 = vpop.f32.mrb[2].mxu1  ;;  %v323_v9 = vadd.f32 %v319_v0, %v315_v48  ;;  %v214_v11 = vadd.f32 %v847_v6, %v117_v62  ;;  %v208_v13 = vpop.f32.mrb[3].mxu0  ;;  %v307_v30 = vadd.f32 %v730_v42, %v303_v63  ;;  %v350_v58 = vld [vmem:[%s1246_s6 + $0x10] sm:$0xff] }
  0xeb   :  { %v682_v10 = vmul.f32 %v678_v1, %v678_v1  ;;  %v299_v12 = vadd.f32 %v869_v7, %v117_v62  ;;  %v293_v14 = vpop.f32.mrb[3].mxu1  ;;  %v322_v15 = vadd.f32 %v318_v4, %v314_v47  ;;  %v209_v17 = vadd.f32 %v208_v13, %v112_v40  ;;  %965 = vmatprep.subr.bf16.mxu0 %v964_v8  ;;  %v353_v62 = vld [vmem:[%s1246_s6 + $0x28] sm:$0xff]  ;;  %v368_v1 = vpop.permute.xlu1 %367 }
  0xec   :  { %v681_v16 = vmul.f32 %v677_v5, %v677_v5  ;;  %v294_v18 = vadd.f32 %v293_v14, %v112_v40  ;;  %v305_v19 = vadd.f32 %v726_v39, %v214_v11  ;;  %v321_v20 = vmul.f32 %v214_v11, %v214_v11  ;;  %967 = vmatpush3.bf16.msra.mxu0 %v964_v8 }
  0xed   :  { %v680_v21 = vsub.f32 %v299_v12, %v214_v11  ;;  %v306_v22 = vadd.f32 %v729_v43, %v302_v3  ;;  %v304_v24 = vadd.f32 %v725_v41, %v209_v17  ;;  %v320_v25 = vmul.f32 %v209_v17, %v209_v17 }
  0xee   :  { %v685_v23 = vadd.f32 %v682_v10, %v681_v16  ;;  %v679_v26 = vsub.f32 %v294_v18, %v209_v17  ;;  %v325_v27 = vadd.f32 %v321_v20, %v317_v51  ;;  %v968_v29 = vpack.c.bf16 %v214_v11, %v209_v17 }
  0xef   :  { %v684_v28 = vmul.f32 %v680_v21, %v680_v21  ;;  %v324_v31 = vadd.f32 %v320_v25, %v316_v56  ;;  %v310_v33 = vmul.f32 %v306_v22, %v306_v22  ;;  %v330_v34 = vadd.f32 %v326_v60, %v322_v15  ;;  %v351_v60 = vld [vmem:[%s1246_s6 + $0x18] sm:$0xff]  ;;  %v378_v6 = vpop.permute.xlu1 %377 }
  0xf0   :  { %v683_v32 = vmul.f32 %v679_v26, %v679_v26  ;;  %969 = vmatprep.subr.bf16.mxu0 %v968_v29  ;;  %v311_v37 = vmul.f32 %v307_v30, %v307_v30  ;;  %v331_v38 = vadd.f32 %v327_v57, %v323_v9  ;;  %v308_v39 = vadd.f32 %v733_v46, %v304_v24  ;;  %v349_v57 = vld [vmem:[%s1246_s6 + $0x8] sm:$0xff]  ;;  %v512_v30 = vld [vmem:[%s1249_s8 + $0x10] sm:$0xff] }
  0xf1   :  { %v309_v40 = vadd.f32 %v734_v44, %v305_v19  ;;  %971 = vmatpush3.bf16.msra.mxu0 %v968_v29  ;;  %v334_v43 = vsub.f32 %v310_v33, %v330_v34  ;;  %v332_v47 = vadd.f32 %v328_v2, %v324_v31  ;;  %v333_v41 = vadd.f32 %v329_v61, %v325_v27  ;;  %v363_v2 = vpop.permute.xlu0 %362  ;;  %v511_v29 = vld [vmem:[%s1249_s8 + $0x8] sm:$0xff] }
  0xf2   :  { %v686_v45 = vadd.f32 %v685_v23, %v683_v32  ;;  %v335_v48 = vsub.f32 %v311_v37, %v331_v38  ;;  %973 = vmatprep.subr.bf16.mxu0 %v1180_v35  ;;  %v312_v49 = vmul.f32 %v308_v39, %v308_v39  ;;  %v1004_v63 = vmov 0.0|0.0  }
  0xf3   :  { %v313_v50 = vmul.f32 %v309_v40, %v309_v40  ;;  %980 = vmatprep.subr.bf16.mxu1 %v1004_v63  ;;  %v1006_v0 = vmov 0.0   ;;  %v388_v17 = vpop.permute.xlu1 %387 }
  0xf4   :  { %v687_v42 = vadd.f32 %v686_v45, %v684_v28  ;;  %v338_v51 = vadd.f32 %v335_v48, %v334_v43  ;;  %v336_v52 = vsub.f32 %v312_v49, %v332_v47  ;;  %915 = vmatprep.mubr.msk.f32.mxu1 %vm1005_vm2, %v1006_v0  ;;  %v510_v28 = vld [vmem:[%s1249_s8] sm:$0xff] }
  0xf5   :  { %v337_v53 = vsub.f32 %v313_v50, %v333_v41  ;;  %975 = vmatpush3.bf16.msra.mxu0 %v1180_v35  ;;  %v373_v8 = vpop.permute.xlu0 %372 }
  0xf6   :  { %v688_v54 = vrot.slane %v687_v42, 4  ;;  %v339_v55 = vadd.f32 %v338_v51, %v336_v52  ;;  %977 = vmatprep.subr.bf16.mxu0 %v1185_v36 }
  0xf7   :  { %v524_v32 = vpop.permute.xlu1 %523 }
  0xf8   :  { %v689_v44 = vadd.f32 %v688_v54, %v687_v42  ;;  %v1194_v46 = vadd.f32 %v339_v55, %v337_v53 }
  0xf9   :  { %979 = vmatpush3.bf16.msra.mxu0 %v1185_v36  ;;  %v352_v36 = vld [vmem:[%s1246_s6 + $0x20] sm:$0xff]  ;;  %v383_v20 = vpop.permute.xlu0 %382 }
  0xfa   :  { %v690_v56 = vrot.slane %v689_v44, 2 }
  0xfb   :  { %v630_v47 = vpop.permute.xlu1 %629 }
  0xfc   :  { %v691_v59 = vadd.f32 %v690_v56, %v689_v44  ;;  %895 = vmatmul.mubr.msk.f32.vlgmr.msra.gmra.mrb[4].mxu0 %vm390_vm1, %v349_v57  ;;  %v659_v56 = vlaneseq }
  0xfd   :  { %897 = vmatprep.mubr.msk.f32.mxu0 %vm390_vm1, %v350_v58  ;;  %v519_v31 = vpop.permute.xlu0 %518 }
  0xfe   :  { %v692_v35 = vrot.slane %v691_v59, 1 }
  0xff   :  { %v640_v55 = vpop.permute.xlu1 %639 }
 0x100   :  { %v693_v61 = vadd.f32 %v692_v35, %v691_v59  ;;  %898 = vmatmul.mubr.msk.f32.gmra.mrb[6].mxu0 %vm390_vm1, %v351_v60  ;;  %v660_v59 = vshrl.u32 %v659_v56, 7 }
 0x101   :  { %900 = vmatprep.mubr.msk.f32.mxu0 %vm390_vm1, %v352_v36  ;;  %v529_v38 = vpop.permute.xlu0 %528 }
 0x102   :  { %695 = vst [vmem:[%s1248_s12 + $0x1] sm:$0x1] %v693_v61  ;;  %v661_v36 = vsub.s32 0, %v660_v59 }
 0x104   :  { %901 = vmatmul.mubr.msk.f32.gmra.mrb[8].mxu0 %vm390_vm1, %v353_v62 }
 0x105   :  { %v635_v48 = vpop.permute.xlu0 %634 }
 0x109   :  { %v657_v62 = vpop.permute.xlu0 %656 }
 0x1cf   :  { %v896_v3 = vpop.f32.mrb[4].mxu0 }
 0x1d0   :  { %v481_v4 = vadd.f32 %v896_v3, %v368_v1  ;;  %v475_v5 = vpop.f32.mrb[5].mxu0  ;;  %v341_v3 = vrot.slane %v1194_v46, 4 }
 0x1d1   :  { %v476_v7 = vadd.f32 %v475_v5, %v363_v2 }
 0x1d2   :  { %v505_v9 = vmax.f32 %v481_v4, 0.0  ;;  %v342_v5 = vadd.f32 %v341_v3, %v1194_v46 }
 0x1d3   :  { %v504_v10 = vmax.f32 %v476_v7, 0.0  ;;  %v899_v11 = vpop.f32.mrb[6].mxu0 }
 0x1d4   :  { %v491_v12 = vadd.f32 %v899_v11, %v378_v6  ;;  %v485_v13 = vpop.f32.mrb[7].mxu0  ;;  %v343_v6 = vrot.slane %v342_v5, 2 }
 0x1d5   :  { %v981_v14 = vpack.c.bf16 %v505_v9, %v504_v10  ;;  %v486_v15 = vadd.f32 %v485_v13, %v373_v8 }
 0x1d6   :  { %v507_v16 = vmax.f32 %v491_v12, 0.0  ;;  %v344_v8 = vadd.f32 %v343_v6, %v342_v5 }
 0x1d7   :  { %v506_v18 = vmax.f32 %v486_v15, 0.0  ;;  %v902_v19 = vpop.f32.mrb[8].mxu0  ;;  %982 = vmatpush3.bf16.msra.mxu1 %v981_v14 }
 0x1d8   :  { %v501_v21 = vadd.f32 %v902_v19, %v388_v17  ;;  %v495_v22 = vpop.f32.mrb[9].mxu0  ;;  %983 = vmatprep.subr.bf16.mxu1 %v1004_v63  ;;  %v345_v10 = vrot.slane %v344_v8, 1 }
 0x1d9   :  { %v984_v23 = vpack.c.bf16 %v507_v16, %v506_v18  ;;  %v496_v24 = vadd.f32 %v495_v22, %v383_v20 }
 0x1da   :  { %v509_v25 = vmax.f32 %v501_v21, 0.0  ;;  %v346_v11 = vadd.f32 %v345_v10, %v344_v8 }
 0x1db   :  { %v508_v26 = vmax.f32 %v496_v24, 0.0  ;;  %985 = vmatpush3.bf16.msra.mxu1 %v984_v23 }
 0x1dc   :  { %986 = vmatprep.subr.bf16.mxu1 %v1004_v63  ;;  %v347_v12 = vmul.f32 0.5, %v346_v11 }
 0x1dd   :  { %v987_v27 = vpack.c.bf16 %v509_v25, %v508_v26 }
 0x1df   :  { %988 = vmatpush3.bf16.msra.mxu1 %v987_v27 }
 0x1e2   :  { %916 = vmatmul.mubr.msk.f32.vlgmr.msra.gmra.mrb[4].mxu1 %vm531_vm3, %v510_v28 }
 0x1e3   :  { %918 = vmatprep.mubr.msk.f32.mxu1 %vm1005_vm2, %v1006_v0 }
 0x1e6   :  { %919 = vmatmul.mubr.msk.f32.gmra.mrb[6].mxu1 %vm531_vm3, %v511_v29 }
 0x1e7   :  { %921 = vmatprep.mubr.msk.f32.mxu1 %vm1005_vm2, %v1006_v0  ;;  %v662_v0 = vrot.slane %v657_v62, %v661_v36 }
 0x1ea   :  { %922 = vmatmul.mubr.msk.f32.gmra.mrb[8].mxu1 %vm531_vm3, %v512_v30 }
 0x2b5   :  { %v607_v33 = vpop.f32.mrb[4].mxu1 }
 0x2b6   :  { %v608_v34 = vadd.f32 %v607_v33, %v519_v31  ;;  %v917_v37 = vpop.f32.mrb[5].mxu1 }
 0x2b8   :  { %v621_v40 = vmax.f32 %v608_v34, 0.0 }
 0x2b9   :  { %v612_v39 = vpop.f32.mrb[6].mxu1 }
 0x2ba   :  { %v613_v45 = vadd.f32 %v612_v39, %v524_v32  ;;  %v920_v43 = vpop.f32.mrb[7].mxu1  ;;  %v642_v50 = vmul.f32 %v630_v47, %v621_v40 }
 0x2bc   :  { %v622_v41 = vmax.f32 %v613_v45, 0.0 }
 0x2bd   :  { %v617_v49 = vpop.f32.mrb[8].mxu1 }
 0x2be   :  { %v643_v42 = vmul.f32 %v635_v48, %v622_v41  ;;  %v618_v51 = vadd.f32 %v617_v49, %v529_v38  ;;  %v923_v52 = vpop.f32.mrb[9].mxu1 }
 0x2c0   :  { %v645_v53 = vadd.f32 %v643_v42, %v642_v50  ;;  %v623_v54 = vmax.f32 %v618_v51, 0.0 }
 0x2c2   :  { %v644_v44 = vmul.f32 %v640_v55, %v623_v54 }
 0x2c4   :  { %v646_v57 = vadd.f32 %v645_v53, %v644_v44 }
 0x2c6   :  { %v647_v58 = vrot.slane %v646_v57, 4 }
 0x2c8   :  { %v648_v35 = vadd.f32 %v647_v58, %v646_v57 }
 0x2ca   :  { %v649_v60 = vrot.slane %v648_v35, 2 }
 0x2cc   :  { %v650_v61 = vadd.f32 %v649_v60, %v648_v35 }
 0x2ce   :  { %v651_v63 = vrot.slane %v650_v61, 1 }
 0x2d0   :  { %v652_v1 = vadd.f32 %v651_v63, %v650_v61 }
 0x2d2   :  { %v663_v2 = vadd.f32 %v662_v0, %v652_v1 }
 0x2d4   :  { %v717_v4 = vmul.f32 -1.442695, %v663_v2 }
 0x2d6   :  { %995 = vpow2.f32 %v717_v4 }
 0x2e0   :  { %v996_v7 = vpop.eup %995 }
 0x2e1   :  { %v667_v9 = vadd.f32 1.0, %v996_v7 }
 0x2e3   :  { %997 = vrcp.f32 %v667_v9 }
 0x2ed   :  { %v998_v13 = vpop.eup %997 }
 0x2ee   :  { %v670_v14 = vadd.f32 %v998_v13, %v347_v12 }
 0x2f0   :  { %v718_v15 = vmul.f32 -1.442695, %v670_v14 }
 0x2f2   :  { %999 = vpow2.f32 %v718_v15 }
 0x2fc   :  { %v1000_v16 = vpop.eup %999 }
 0x2fd   :  { %v674_v17 = vadd.f32 1.0, %v1000_v16 }
 0x2ff   :  { %1001 = vrcp.f32 %v674_v17 }
 0x309   :  { %v1002_v18 = vpop.eup %1001 }
 0x30a   :  { %694 = vst [vmem:[%s1248_s12] sm:$0x1] %v1002_v18 }

</bundles_post_ra>
